<compile_context>
chip_gen: v5e
topology: v5e:2x2
jax: 0.10.0
libtpu: 0.0.40
codegen_flags: <defaults>
</compile_context>

<pallas_src>
import functools

import jax
import jax.numpy as jnp
from jax.experimental import pallas as pl
from jax.experimental.pallas import tpu as pltpu

LANE = 128
SUBLANE = 8


def _focal_loss_kernel(x_ref, t_ref, o_ref, *, alpha, gamma, n_valid,
                       tile_rows, steps, has_tail, approx):
    c = pl.program_id(0)          # core / outer (parallel) axis
    i = pl.program_id(1)          # step (arbitrary) axis
    blk_elems = tile_rows * LANE  # python int

    # Zero the per-core resident accumulator block on the first step.
    @pl.when(i == 0)
    def _():
        o_ref[...] = jnp.zeros_like(o_ref)

    x = x_ref[...].astype(jnp.float32)
    t = t_ref[...].astype(jnp.float32)

    # Fused sigmoid + numerically stable BCE-with-logits sharing one exp.
    e = jnp.exp(-jnp.abs(x))                          # EUP exp
    inv = pl.reciprocal(1.0 + e, approx=approx)       # EUP vrcp
    pos = x >= 0.0
    e_inv = e * inv
    p = jnp.where(pos, inv, e_inv)                    # sigmoid(x)
    one_minus_p = jnp.where(pos, e_inv, inv)          # 1 - sigmoid(x), no cancellation
    ce = jnp.maximum(x, 0.0) - x * t + jnp.log1p(e)   # EUP log1p

    # q = 1 - p_t, built without cancellation, clamped for safety.
    q = jnp.maximum(one_minus_p * t + p * (1.0 - t), 0.0)

    g = float(gamma)
    gi = int(g)
    if g == gi and 0 <= gi <= 8:
        # small integer gamma: repeated multiplication (no exp/log on EUP)
        mod = None
        if gi:
            mod = q
            for _ in range(gi - 1):
                mod = mod * q
    else:
        mod = q ** g

    loss = ce if mod is None else ce * mod

    a = float(alpha)
    if a >= 0:
        if a == 1.0:
            loss = loss * t                            # alpha_t == t when alpha == 1
        else:
            loss = (a * t + (1.0 - a) * (1.0 - t)) * loss

    if not has_tail:
        # Aligned fast path: no mask code emitted at all.
        o_ref[...] += loss.reshape(-1, SUBLANE, LANE).sum(axis=0)
    else:
        global_blk = c * steps + i
        start = global_blk * blk_elems
        needs_mask = start + blk_elems > n_valid

        @pl.when(jnp.logical_not(needs_mask))
        def _():
            o_ref[...] += loss.reshape(-1, SUBLANE, LANE).sum(axis=0)

        @pl.when(needs_mask)
        def _():
            rid = jax.lax.broadcasted_iota(jnp.int32, (tile_rows, LANE), 0)
            lid = jax.lax.broadcasted_iota(jnp.int32, (tile_rows, LANE), 1)
            idx = start + rid * LANE + lid
            masked = jnp.where(idx < n_valid, loss, 0.0)
            o_ref[...] += masked.reshape(-1, SUBLANE, LANE).sum(axis=0)


def focal_loss(inputs, targets, *, alpha=1.0, gamma=2.0, reduction="sum",
               tile_rows=2048, num_cores=2, approx_reciprocal=True):
    """Sigmoid focal loss (torchvision semantics). inputs: logits, targets: labels."""
    x = inputs.reshape(-1)
    t = targets.reshape(-1)
    n = x.shape[0]

    # Tile sizing: lane-dense (rows, 128) slab, rows per block a multiple of 8,
    # adapted down for small inputs so we don't over-pad.
    tile_rows = max(SUBLANE, (int(tile_rows) // SUBLANE) * SUBLANE)
    rows_needed = pl.cdiv(n, LANE)
    tr = max(SUBLANE,
             min(tile_rows,
                 ((pl.cdiv(rows_needed, num_cores) + SUBLANE - 1) // SUBLANE) * SUBLANE))
    steps = pl.cdiv(rows_needed, num_cores * tr)
    rows_pad = num_cores * steps * tr
    pad = rows_pad * LANE - n
    if pad:  # fast path: aligned sizes take no pad copy at all
        x = jnp.pad(x, (0, pad))
        t = jnp.pad(t, (0, pad))
    xp = x.reshape(rows_pad, LANE)
    tp = t.reshape(rows_pad, LANE)

    kernel = functools.partial(
        _focal_loss_kernel, alpha=float(alpha), gamma=float(gamma),
        n_valid=int(n), tile_rows=tr, steps=int(steps),
        has_tail=bool(pad), approx=bool(approx_reciprocal))

    partials = pl.pallas_call(
        kernel,
        out_shape=jax.ShapeDtypeStruct((num_cores * SUBLANE, LANE), jnp.float32),
        grid_spec=pltpu.PrefetchScalarGridSpec(
            num_scalar_prefetch=0,
            grid=(num_cores, steps),
            in_specs=[
                pl.BlockSpec((tr, LANE), lambda c, i: (c * steps + i, 0)),
                pl.BlockSpec((tr, LANE), lambda c, i: (c * steps + i, 0)),
            ],
            out_specs=pl.BlockSpec((SUBLANE, LANE), lambda c, i: (c, 0)),
        ),
        compiler_params=pltpu.CompilerParams(
            dimension_semantics=("parallel", "arbitrary")),
    )(xp, tp)

    total = jnp.sum(partials)
    if reduction == "sum":
        return total
    if reduction == "mean":
        return total / n
    # TODO(synk): reduction="none" (full per-element output map) not wired up;
    # the module's default is "sum".
    raise NotImplementedError(f"reduction={reduction!r}")


def _focal_loss_ref(inputs, targets, alpha=1.0, gamma=2.0):
    """Plain-JAX reference mirroring torchvision.ops.sigmoid_focal_loss (sum)."""
    x = inputs.astype(jnp.float32)
    t = targets.astype(jnp.float32)
    p = jax.nn.sigmoid(x)
    ce = jnp.maximum(x, 0.0) - x * t + jnp.log1p(jnp.exp(-jnp.abs(x)))
    p_t = p * t + (1 - p) * (1 - t)
    loss = ce * (1 - p_t) ** gamma
    if alpha >= 0:
        alpha_t = alpha * t + (1 - alpha) * (1 - t)
        loss = alpha_t * loss
    return jnp.sum(loss)


if __name__ == "__main__":
    key = jax.random.PRNGKey(0)
    kx, kt = jax.random.split(key)

    # binary segmentation logits / labels, NCHW (module defaults: alpha=1, gamma=2, sum)
    x = jax.random.normal(kx, (2, 4, 16, 16), dtype=jnp.float32) * 2.0
    t = jax.random.bernoulli(kt, 0.3, (2, 4, 16, 16)).astype(jnp.float32)

    loss = focal_loss(x, t, alpha=1.0, gamma=2.0, reduction="sum")
    loss = jax.block_until_ready(loss)
    ref = _focal_loss_ref(x, t, alpha=1.0, gamma=2.0)
    # tolerance relaxed slightly because of the EUP approximate reciprocal
    assert jnp.allclose(loss, ref, rtol=5e-3, atol=1e-3), (loss, ref)

    # ragged (non-tile-aligned) shape + alpha!=1 exercises the in-kernel tail mask
    x2 = jax.random.normal(kt, (3, 1, 13, 17), dtype=jnp.float32)
    t2 = jax.random.bernoulli(kx, 0.5, (3, 1, 13, 17)).astype(jnp.float32)
    loss2 = jax.block_until_ready(focal_loss(x2, t2, alpha=0.25, gamma=2.0))
    ref2 = _focal_loss_ref(x2, t2, alpha=0.25, gamma=2.0)
    assert jnp.allclose(loss2, ref2, rtol=5e-3, atol=1e-3), (loss2, ref2)

    print("KERNEL_OK")
</pallas_src>

<mosaic_0001>
module attributes {stable_mosaic.version = 11 : i64} {
  func.func @_focal_loss_kernel(%arg0: i32, %arg1: i32, %arg2: memref<8x128xf32, #tpu.memory_space<vmem>>, %arg3: memref<8x128xf32, #tpu.memory_space<vmem>>, %arg4: memref<8x128xf32, #tpu.memory_space<vmem>>) attributes {dimension_semantics = [#tpu.dimension_semantics<parallel>, #tpu.dimension_semantics<arbitrary>], iteration_bounds = array<i64: 2, 1>, scalar_prefetch = 0 : i64, scratch_operands = 0 : i64, tpu.core_type = #tpu.core_type<tc>, window_params = [{transform_indices = @transform_0, window_bounds = array<i64: 8, 128>}, {transform_indices = @transform_1, window_bounds = array<i64: 8, 128>}, {transform_indices = @transform_2, window_bounds = array<i64: 8, 128>}]} {
    %c0_i32 = arith.constant 0 : i32
    %0 = arith.cmpi eq, %arg1, %c0_i32 : i32
    %1 = arith.extui %0 : i1 to i32
    %c0_i32_0 = arith.constant 0 : i32
    %2 = arith.cmpi ne, %1, %c0_i32_0 : i32
    scf.if %2 {
      %cst_14 = arith.constant 0.000000e+00 : f32
      %38 = vector.broadcast %cst_14 : f32 to vector<8x128xf32>
      %c0_15 = arith.constant 0 : index
      %c0_16 = arith.constant 0 : index
      %39 = vector.load %arg4[%c0_15, %c0_16] : memref<8x128xf32, #tpu.memory_space<vmem>>, vector<8x128xf32>
      tpu.vector_store %arg4[%c0_15, %c0_16], %38 {strides = array<i32>} : memref<8x128xf32, #tpu.memory_space<vmem>>, vector<8x128xf32>,
    } else {
    }
    %c0 = arith.constant 0 : index
    %c0_1 = arith.constant 0 : index
    %3 = vector.load %arg2[%c0, %c0_1] : memref<8x128xf32, #tpu.memory_space<vmem>>, vector<8x128xf32>
    %c0_2 = arith.constant 0 : index
    %c0_3 = arith.constant 0 : index
    %4 = vector.load %arg3[%c0_2, %c0_3] : memref<8x128xf32, #tpu.memory_space<vmem>>, vector<8x128xf32>
    %5 = math.absf %3 : vector<8x128xf32>
    %cst = arith.constant 0.000000e+00 : f32
    %6 = vector.broadcast %cst : f32 to vector<8x128xf32>
    %7 = arith.subf %6, %5 : vector<8x128xf32>
    %8 = math.exp %7 : vector<8x128xf32>
    %cst_4 = arith.constant 1.000000e+00 : f32
    %9 = vector.broadcast %cst_4 : f32 to vector<8x128xf32>
    %10 = arith.addf %9, %8 : vector<8x128xf32>
    %11 = tpu.reciprocal %10 {approx = true} : vector<8x128xf32> -> vector<8x128xf32>
    %cst_5 = arith.constant 0.000000e+00 : f32
    %12 = vector.broadcast %cst_5 : f32 to vector<8x128xf32>
    %13 = arith.cmpf oge, %3, %12 : vector<8x128xf32>
    %14 = arith.mulf %8, %11 : vector<8x128xf32>
    %15 = arith.select %13, %11, %14 : vector<8x128xi1>, vector<8x128xf32>
    %16 = arith.select %13, %14, %11 : vector<8x128xi1>, vector<8x128xf32>
    %cst_6 = arith.constant 0.000000e+00 : f32
    %17 = vector.broadcast %cst_6 : f32 to vector<8x128xf32>
    %18 = arith.maximumf %3, %17 : vector<8x128xf32>
    %19 = arith.mulf %3, %4 : vector<8x128xf32>
    %20 = arith.subf %18, %19 : vector<8x128xf32>
    %21 = math.log1p %8 : vector<8x128xf32>
    %22 = arith.addf %20, %21 : vector<8x128xf32>
    %23 = arith.mulf %16, %4 : vector<8x128xf32>
    %cst_7 = arith.constant 1.000000e+00 : f32
    %24 = vector.broadcast %cst_7 : f32 to vector<8x128xf32>
    %25 = arith.subf %24, %4 : vector<8x128xf32>
    %26 = arith.mulf %15, %25 : vector<8x128xf32>
    %27 = arith.addf %23, %26 : vector<8x128xf32>
    %cst_8 = arith.constant 0.000000e+00 : f32
    %28 = vector.broadcast %cst_8 : f32 to vector<8x128xf32>
    %29 = arith.maximumf %27, %28 : vector<8x128xf32>
    %30 = arith.mulf %29, %29 : vector<8x128xf32>
    %31 = arith.mulf %22, %30 : vector<8x128xf32>
    %32 = arith.mulf %31, %4 : vector<8x128xf32>
    %c0_9 = arith.constant 0 : index
    %c0_10 = arith.constant 0 : index
    %33 = vector.load %arg4[%c0_9, %c0_10] : memref<8x128xf32, #tpu.memory_space<vmem>>, vector<8x128xf32>
    %34 = vector.shape_cast %32 : vector<8x128xf32> to vector<1x8x128xf32>
    %cst_11 = arith.constant dense<0.000000e+00> : vector<8x128xf32>
    %35 = vector.multi_reduction <add>, %34, %cst_11 [0] : vector<1x8x128xf32> to vector<8x128xf32>
    %36 = arith.addf %33, %35 : vector<8x128xf32>
    %c0_12 = arith.constant 0 : index
    %c0_13 = arith.constant 0 : index
    %37 = vector.load %arg4[%c0_12, %c0_13] : memref<8x128xf32, #tpu.memory_space<vmem>>, vector<8x128xf32>
    tpu.vector_store %arg4[%c0_12, %c0_13], %36 {strides = array<i32>} : memref<8x128xf32, #tpu.memory_space<vmem>>, vector<8x128xf32>,
    return
  }
  func.func @transform_0(%arg0: i32, %arg1: i32) -> (i32, i32) {
    %c1_i32 = arith.constant 1 : i32
    %0 = arith.muli %arg0, %c1_i32 : i32
    %1 = arith.addi %0, %arg1 : i32
    %c0_i32 = arith.constant 0 : i32
    %c0_i32_0 = arith.constant 0 : i32
    return %1, %c0_i32 : i32, i32
  }
  func.func @transform_1(%arg0: i32, %arg1: i32) -> (i32, i32) {
    %c1_i32 = arith.constant 1 : i32
    %0 = arith.muli %arg0, %c1_i32 : i32
    %1 = arith.addi %0, %arg1 : i32
    %c0_i32 = arith.constant 0 : i32
    %c0_i32_0 = arith.constant 0 : i32
    return %1, %c0_i32 : i32, i32
  }
  func.func @transform_2(%arg0: i32, %arg1: i32) -> (i32, i32) {
    %c0_i32 = arith.constant 0 : i32
    %c0_i32_0 = arith.constant 0 : i32
    return %arg0, %c0_i32 : i32, i32
  }
}

</mosaic_0001>

<bundles_post_ra>
// kernel: tpu_custom_call.1
= control target key start
LH: loop header
LB: loop body
LE: loop exit
PB: predicated region body
PF: predicated region fallthrough
CT: control target
= control target key end

     0   :  { %7 = vsyncpa [#allocation3], 0  ;;  %s767_s0 = inlined_call_operand.hbm [shape: f32[16,128], index: 0, kind: input, shape index: {}]   ;;  %s768_s1 = inlined_call_operand.hbm [shape: f32[16,128], index: 1, kind: input, shape index: {}]   ;;  %s769_s2 = inlined_call_operand.hbm [shape: f32[16,128], index: 2, kind: output, shape index: {}]  }
   0x1   :  { %9 = vsyncpa [#allocation3 + $0x1], 0 }
   0x2   :  { %10 = vsyncpa [#allocation6], 0 }
   0x3   :  { %12 = vsyncpa [#allocation6 + $0x1], 0 }
   0x4   :  { %13 = vsyncpa [#allocation4], 0 }
   0x5   :  { %15 = vsyncpa [#allocation4 + $0x1], 0  ;;  %s634_s9 = smov 0   ;;  %s636_s10 = smov 0  }
   0x6   :  { %s638_s11 = smov 0   ;;  %s640_s12 = smov 0  }
   0x7   :  { %s642_s13 = smov 0   ;;  %s644_s14 = smov 0  }
   0x8 LB: > { %s381_s15 = sadd.s32 4294967295, %s617_s14   ;;  %s382_s16 = sadd.s32 4294967294, %s617_s14   ;;  %s617_s14 = sphi %s644_s14, %s21_s14   ;;  %s613_s13 = sphi %s642_s13, %s778_s13   ;;  %s609_s12 = sphi %s640_s12, %s777_s12   ;;  %s605_s11 = sphi %s638_s11, %s776_s11   ;;  %s601_s10 = sphi %s636_s10, %s775_s10   ;;  %s597_s9 = sphi %s634_s9, %s774_s9  }
   0x9   : > { %s33_s17 = sadd.s32 1, %s613_s13  ;;  %s42_s18 = sadd.s32 1, %s605_s11 }
   0xa   : > { %p35_p0 = scmp.ge.s32.totalorder %s33_s17, 2  ;;  %p49_p1 = scmp.ne.s32.totalorder %s605_s11, %s601_s10 }
   0xb   : > { %p50_p2 = scmp.eq.s32.totalorder %s617_s14, 0  ;;  %p55_p3 = scmp.ne.s32.totalorder %s601_s10, %s597_s9 }
   0xc   : > { %s780_s17 = smov (%p35_p0, %s33_s17), 0  ;;  %p56_p5 = scmp.eq.s32.totalorder %s381_s15, 0 }
   0xd   : > { %p675_p4 = por %p50_p2, %p49_p1  ;;  %s39_s20 = ssub.s32 %s613_s13, %s780_s17 }
   0xe   : > { %p107_p6 = scmp.eq.s32.totalorder %s381_s15, 1  ;;  %p40_p7 = scmp.eq.s32.totalorder %s39_s20, 0 }
   0xf   : > { %p681_p8 = por %p56_p5, %p55_p3  ;;  %p113_p10 = scmp.eq.s32.totalorder %s382_s16, 1 }
  0x10   : > { %p685_p9 = por %p107_p6, %p49_p1  ;;  %p384_p12 = scmp.ge.s32.totalorder %s617_s14, 2 }
  0x11   : > { %s690_s23 = scalar_select %p40_p7, %s605_s11, %s42_s18  }
  0x12   : > { %p692_p11 = por %p113_p10, %p55_p3  ;;  %p414_p13 = scmp.lt.s32.totalorder %s617_s14, 2 }
  0x13   : > { %s133_s25 = sand.u32 1, %s605_s11   ;;  %s386_s27 = sshll.u32 %s613_s13, 3 }
  0x14   : > { %s385_s26 = sshll.u32 %s133_s25, 3  ;;  %s142_s30 = scalar_lea.hbm %s767_s0, %s386_s27 }
  0x15   : > { %s137_s3 = scalar_lea.vmem [#allocation2], %s385_s26  ;;  %s144_s5 = sshll.u32 %s142_s30, 4  ;;  %s145_s5 = int_to_ptr.hbm [resolvable:$true] %s144_s5 }
  0x16   : > { %s146_s4 = sshll.u32 %s137_s3, 4  ;;  %p404_p0 = pnand %p414_p13, %p675_p4  ;;  %s147_s4 = int_to_ptr.vmem [resolvable:$true] %s146_s4 }
  0x17   : > { %p389_p1 = scmp.ge.s32.totalorder %s617_s14, 1  ;;  %p171_p2 = scmp.lt.s32.totalorder %s617_s14, 3 }
  0x18   : > { %s134_s6 = scalar_lea.sflag [#allocation3], %s133_s25  ;;  %s162_s15 = scalar_lea.hbm %s768_s1, %s386_s27 }
  0x19   : > { %406 = dma.hbm_to_vmem [thread:$0]  (!%p404_p0), %s145_s5, 128, %s147_s4, %s134_s6  }
  0x1a   : > { %p172_p3 = pnand %p389_p1, %p171_p2  ;;  %s157_s16 = scalar_lea.vmem [#allocation5], %s385_s26 }
  0x1b   : > { %s166_s18 = sshll.u32 %s157_s16, 4  ;;  %s164_s20 = sshll.u32 %s162_s15, 4  ;;  %s167_s18 = int_to_ptr.vmem [resolvable:$true] %s166_s18  ;;  %s165_s20 = int_to_ptr.hbm [resolvable:$true] %s164_s20 }
  0x1c   : > { %s154_s28 = scalar_lea.sflag [#allocation6], %s133_s25  ;;  %175 = sbr.rel (%p172_p3) target bundleno = 77 (0x4d), region = 28 }
  0x1d   : > { %409 = dma.hbm_to_vmem [thread:$0]  (!%p404_p0), %s165_s20, 128, %s167_s18, %s154_s28  }
  0x1e   : > { %s711_s19 = sand.u32 (!%p172_p3), 1, %s601_s10  }
  0x1f   : > { %s714_s29 = sshll.u32 (!%p172_p3), %s711_s19, 3  ;;  %s178_s30 = scalar_lea.sflag (!%p172_p3), [#allocation3], %s711_s19 }
  0x20   : > { %s181_s3 = scalar_lea.vmem (!%p172_p3), [#allocation2], %s714_s29 }
  0x21   : > { %584 = dma.done.wait (%p681_p8), %s178_s30, 128  }
  0x22   : > { %586 = vsyncadd (%p681_p8), %s178_s30, 4294967168  ;;  %s188_s25 = scalar_lea.sflag [#allocation6], %s711_s19  ;;  %s191_s26 = scalar_lea.vmem [#allocation5], %s714_s29 }
  0x23   : > { %588 = dma.done.wait (%p681_p8), %s188_s25, 128  }
  0x24   : > { %590 = vsyncadd (%p681_p8), %s188_s25, 4294967168  ;;  %v225_v0 = vld [vmem:[%s181_s3] sm:$0xff]  ;;  %v226_v7 = vld [vmem:[%s191_s26] sm:$0xff]  ;;  %s394_s21 = sshll.u32 %s609_s12, 3  ;;  %s217_s6 = scalar_lea.vmem [#allocation7], %s714_s29 }
  0x25   : > { %v227_v1 = vand.u32 2147483647, %v225_v0  ;;  %vm233_vm0 = vcmp.ge.f32.partialorder %v225_v0, 0.0  ;;  %v237_v11 = vmax.f32 %v225_v0, 0.0  ;;  %v238_v12 = vmul.f32 %v226_v7, %v225_v0  ;;  %s273_s5 = scalar_lea.hbm %s769_s2, %s394_s21  ;;  %s275_s7 = sshll.u32 %s217_s6, 4  ;;  %s276_s7 = int_to_ptr.vmem [resolvable:$true] %s275_s7 }
  0x26   : > { %v251_v13 = vsub.f32 1.0, %v226_v7  ;;  %s277_s8 = sshll.u32 %s273_s5, 4  ;;  %s263_s15 = scalar_lea.sflag [#allocation4], %s711_s19  ;;  %s278_s8 = int_to_ptr.hbm [resolvable:$true] %s277_s8 }
  0x27   : > { %v228_v2 = vsub.f32 0.0, %v227_v1  ;;  %v239_v20 = vsub.f32 %v237_v11, %v238_v12  ;;  %s545_s16 = sshra.s32 %s278_s8, 4  ;;  %s551_s28 = scalar_lea.hbm %s769_s2, 16  ;;  %s546_s16 = int_to_ptr.hbm [resolvable:$true] %s545_s16 }
  0x28   : > { %s547_s12 = scalar_lea.hbm %s546_s16, 8  ;;  %p552_p7 = scmp.lt.s32.totalorder %s546_s16, %s769_s2 }
  0x29   : > { %v229_v3 = vmul.f32 1.442695, %v228_v2  ;;  %p548_p4 = scmp.ne.s32.totalorder %s546_s16, %s547_s12  ;;  %p553_p8 = scmp.lt.s32.totalorder %s551_s28, %s547_s12 }
  0x2b   : > { %465 = vpow2.f32 %v229_v3  ;;  %p549_p5 = pnand %p548_p4, %p685_p9  ;;  %p554_p10 = por %p553_p8, %p552_p7 }
  0x2d   : > { %p550_p6 = pneg %p549_p5 }
  0x2f   : > { %p555_p13 = pnand %p554_p10, %p550_p6 }
  0x31   : > { %v466_v4 = vpop.eup %465 }
  0x32   : > { %v231_v5 = vadd.f32 1.0, %v466_v4  ;;  %v243_v6 = vmul.f32 -0.5, %v466_v4  ;;  %v246_v9 = vand.u32 2147483647, %v466_v4 }
  0x34   : > { %467 = vrcp.f32 %v231_v5  ;;  %v244_v8 = vadd.f32 1.0, %v243_v6  ;;  %vm247_vm1 = vcmp.lt.f32.partialorder %v246_v9, 0.0004427343 }
  0x35   : > { %469 = vlog2.f32 %v231_v5 }
  0x36   : > { %v245_v16 = vmul.f32 %v466_v4, %v244_v8 }
  0x3a   : > { %v468_v10 = vpop.eup %467 }
  0x3b   : > { %v470_v14 = vpop.eup %469  ;;  %v234_v15 = vmul.f32 %v468_v10, %v466_v4 }
  0x3c   : > { %v242_v17 = vmul.f32 0.6931472, %v470_v14 }
  0x3d   : > { %v235_v18 = vsel %vm233_vm0, %v468_v10, %v234_v15  ;;  %v236_v19 = vsel %vm233_vm0, %v234_v15, %v468_v10 }
  0x3e   : > { %v250_v21 = vmul.f32 %v236_v19, %v226_v7  ;;  %v252_v22 = vmul.f32 %v251_v13, %v235_v18  ;;  %v248_v23 = vsel %vm247_vm1, %v245_v16, %v242_v17 }
  0x3f   : > { %v249_v25 = vadd.f32 %v248_v23, %v239_v20 }
  0x40   : > { %v253_v24 = vadd.f32 %v252_v22, %v250_v21 }
  0x42   : > { %v254_v26 = vmax.f32 %v253_v24, 0.0 }
  0x44   : > { %v255_v27 = vmul.f32 %v254_v26, %v254_v26 }
  0x46   : > { %v256_v28 = vmul.f32 %v255_v27, %v249_v25 }
  0x48   : > { %v257_v29 = vmul.f32 %v256_v28, %v226_v7 }
  0x4a   : > { %261 = vst [vmem:[%s217_s6] sm:$0xff] %v257_v29 }
  0x4b   : > { %558 = shalt.err (!%p555_p13)
}
  0x4c   : > { %401 = dma.vmem_to_hbm [thread:$0]  (%p685_p9), %s276_s7, 128, %s278_s8, %s263_s15  }
  0x4d PF: > { %s289_s19 = sand.u32 1, %s597_s9   ;;  %p411_p0 = pnand %p384_p12, %p692_p11 }
  0x4e   : > { %s290_s3 = scalar_lea.sflag [#allocation4], %s289_s19 }
  0x4f   : > { %p412_p1 = pneg %p411_p0 }
  0x51   : > { %592 = dma.done.wait (%p412_p1), %s290_s3, 128  }
  0x52   : > { %594 = vsyncadd (%p412_p1), %s290_s3, 4294967168  ;;  %s21_s14 = sadd.s32 1, %s617_s14   ;;  %s774_s9 = smov %s601_s10 }
  0x53   : > { %p18_p2 = scmp.ge.s32.totalorder %s21_s14, 4   ;;  %s775_s10 = smov %s605_s11 }
  0x54   : > { %s776_s11 = smov %s690_s23  ;;  %s777_s12 = smov %s613_s13 }
  0x55   : > { %s778_s13 = smov %s780_s17  ;;  %20 = sbr.rel (!%p18_p2) target bundleno = 8 (0x8), region = 90 }
  0x5a   :  { %296 = vsyncpa [#allocation3], 1 }
  0x5b   :  { %298 = vsyncpa [#allocation3 + $0x1], 1 }
  0x5c   :  { %299 = vsyncpa [#allocation6], 1 }
  0x5d   :  { %301 = vsyncpa [#allocation6 + $0x1], 1 }
  0x5e   :  { %302 = vsyncpa [#allocation4], 1 }
  0x5f   :  { %304 = vsyncpa [#allocation4 + $0x1], 1 }

</bundles_post_ra>
